<compile_context>
chip_gen: v7x
topology: tpu7x:2x2x1
jax: 0.10.0
libtpu: 0.0.40
codegen_flags: <defaults>
</compile_context>

<pallas_src>
import math

import jax
import jax.numpy as jnp
from jax.experimental import pallas as pl
from jax.experimental.pallas import tpu as pltpu

NEG_INF = -1e30  # large finite negative: avoids exp(-inf - (-inf)) NaNs


def _pick_tile(dim, target, align):
    """Largest multiple of `align` that divides `dim` and is <= target, else `dim`."""
    t = min(target, dim)
    t = max(align, (t // align) * align)
    while t > align and dim % t:
        t -= align
    return t if dim % t == 0 else dim


# ----------------------------------------------------------------------------
# Tiled linear (matmul + bias) kernel -- bf16 operands, f32 accumulator
# ----------------------------------------------------------------------------
def _linear_kernel(x_ref, w_ref, b_ref, o_ref, acc_ref):
    @pl.when(pl.program_id(2) == 0)
    def _():
        acc_ref[...] = jnp.zeros_like(acc_ref)

    acc_ref[...] += jnp.dot(
        x_ref[...], w_ref[...], preferred_element_type=jnp.float32
    )

    @pl.when(pl.program_id(2) == pl.num_programs(2) - 1)
    def _():
        o_ref[...] = (acc_ref[...] + b_ref[...].astype(jnp.float32)).astype(o_ref.dtype)


def linear(x2d, w, b, *, out_dtype=None, tm=256, tn=256, tk=512):
    """x2d: (M, K) bf16, w: (K, N) bf16, b: (1, N) bf16 -> (M, N) out_dtype."""
    M, K = x2d.shape
    K2, N = w.shape
    assert K == K2
    out_dtype = out_dtype or x2d.dtype
    tm = _pick_tile(M, tm, 8)
    tn = _pick_tile(N, tn, 128)
    tk = _pick_tile(K, tk, 128)
    assert M % tm == 0 and N % tn == 0 and K % tk == 0
    grid = (M // tm, N // tn, K // tk)

    return pl.pallas_call(
        _linear_kernel,
        out_shape=jax.ShapeDtypeStruct((M, N), out_dtype),
        grid_spec=pltpu.PrefetchScalarGridSpec(
            num_scalar_prefetch=0,
            grid=grid,
            in_specs=[
                pl.BlockSpec((tm, tk), lambda i, j, k: (i, k)),
                pl.BlockSpec((tk, tn), lambda i, j, k: (k, j)),
                pl.BlockSpec((1, tn), lambda i, j, k: (0, j)),
            ],
            out_specs=pl.BlockSpec((tm, tn), lambda i, j, k: (i, j)),
            scratch_shapes=[pltpu.VMEM((tm, tn), jnp.float32)],
        ),
        compiler_params=pltpu.CompilerParams(
            dimension_semantics=("parallel", "parallel", "arbitrary"),
            vmem_limit_bytes=48 * 1024 * 1024,
        ),
    )(x2d, w, b)


# ----------------------------------------------------------------------------
# Flash attention kernel (causal, head-batched, online softmax)
# ----------------------------------------------------------------------------
def _make_flash_kernel(tq, tkv):
    def kernel(q_ref, k_ref, v_ref, o_ref, m_sc, l_sc, acc_sc):
        qi = pl.program_id(2)
        kj = pl.program_id(3)

        # Last KV tile this q tile can causally see (compute + DMA skipping).
        last_kv = ((qi + 1) * tq - 1) // tkv

        @pl.when(kj == 0)
        def _():
            m_sc[...] = jnp.full_like(m_sc, NEG_INF)
            l_sc[...] = jnp.zeros_like(l_sc)
            acc_sc[...] = jnp.zeros_like(acc_sc)

        @pl.when(kj <= last_kv)
        def _():
            q = q_ref[...]                                  # (tq, hd) bf16, pre-scaled
            k = k_ref[...]                                  # (tkv, hd) bf16

            # Q @ K^T without an explicit transpose: contract last dims.
            s = jax.lax.dot_general(
                q, k, (((1,), (1,)), ((), ())),
                preferred_element_type=jnp.float32)         # (tq, tkv) f32

            # Per-tile causal mask from absolute offsets.
            row = qi * tq + jax.lax.broadcasted_iota(jnp.int32, (tq, tkv), 0)
            col = kj * tkv + jax.lax.broadcasted_iota(jnp.int32, (tq, tkv), 1)
            s = jnp.where(col <= row, s, NEG_INF)

            m_prev = m_sc[...]
            m_new = jnp.maximum(m_prev, jnp.max(s, axis=-1, keepdims=True))
            alpha = jnp.exp(m_prev - m_new)
            p = jnp.exp(s - m_new)                          # unnormalized, f32
            l_sc[...] = alpha * l_sc[...] + jnp.sum(p, axis=-1, keepdims=True)

            pv = jax.lax.dot_general(
                p.astype(v_ref.dtype), v_ref[...],
                (((1,), (0,)), ((), ())),
                preferred_element_type=jnp.float32)         # (tq, hd)
            acc_sc[...] = alpha * acc_sc[...] + pv
            m_sc[...] = m_new

        @pl.when(kj == last_kv)
        def _():
            # Deferred normalization: one approx reciprocal per q row (EUP).
            o_ref[...] = (acc_sc[...] *
                          pl.reciprocal(l_sc[...], approx=True)).astype(o_ref.dtype)

    return kernel


def flash_attention(q, k, v, *, tq=128, tkv=256):
    """q, k, v: (B, H, T, hd) bf16 (q pre-scaled) -> causal attention (B, H, T, hd) bf16."""
    B, H, T, hd = q.shape
    tq = _pick_tile(T, tq, 8)
    tkv = _pick_tile(T, tkv, 8)
    assert T % tq == 0 and T % tkv == 0
    grid = (B, H, T // tq, T // tkv)
    kernel = _make_flash_kernel(tq, tkv)

    def q_map(b, h, i, j):
        return (b, h, i, 0)

    def kv_map(b, h, i, j):
        # Clamp to the last causally-visible kv tile: skipped steps revisit the
        # already-resident block instead of issuing a dead HBM->VMEM DMA.
        last = ((i + 1) * tq - 1) // tkv
        return (b, h, jnp.minimum(j, last), 0)

    return pl.pallas_call(
        kernel,
        out_shape=jax.ShapeDtypeStruct((B, H, T, hd), q.dtype),
        grid_spec=pltpu.PrefetchScalarGridSpec(
            num_scalar_prefetch=0,
            grid=grid,
            in_specs=[
                pl.BlockSpec((None, None, tq, hd), q_map),
                pl.BlockSpec((None, None, tkv, hd), kv_map),
                pl.BlockSpec((None, None, tkv, hd), kv_map),
            ],
            out_specs=pl.BlockSpec((None, None, tq, hd), q_map),
            scratch_shapes=[
                pltpu.VMEM((tq, 1), jnp.float32),    # running max m
                pltpu.VMEM((tq, 1), jnp.float32),    # running denom l
                pltpu.VMEM((tq, hd), jnp.float32),   # output accumulator
            ],
        ),
        compiler_params=pltpu.CompilerParams(
            dimension_semantics=("parallel", "parallel", "parallel", "arbitrary"),
            vmem_limit_bytes=48 * 1024 * 1024,
        ),
    )(q, k, v)


# ----------------------------------------------------------------------------
# Full module forward
# ----------------------------------------------------------------------------
def causal_self_attention(x, w_qkv, b_qkv, w_proj, b_proj, n_head):
    """x: (B, T, C). w_qkv: (C, 3C), b_qkv: (1, 3C), w_proj: (C, C), b_proj: (1, C)."""
    B, T, C = x.shape
    assert C % n_head == 0
    hd = C // n_head
    scale = 1.0 / math.sqrt(hd)

    # One-time bf16 casts; fold the 1/sqrt(hd) softmax scale into the q columns
    # of the qkv projection (exact for power-of-two scale).
    col_scale = jnp.concatenate(
        [jnp.full((C,), scale, jnp.float32), jnp.ones((2 * C,), jnp.float32)]
    )[None, :]
    w_qkv_bf = (w_qkv * col_scale).astype(jnp.bfloat16)
    b_qkv_bf = (b_qkv * col_scale).astype(jnp.bfloat16)
    w_proj_bf = w_proj.astype(jnp.bfloat16)
    b_proj_bf = b_proj.astype(jnp.bfloat16)
    x_bf = x.astype(jnp.bfloat16)

    qkv = linear(x_bf.reshape(B * T, C), w_qkv_bf, b_qkv_bf,
                 out_dtype=jnp.bfloat16)                      # (B*T, 3C) bf16
    qkv = qkv.reshape(B, T, 3, n_head, hd)
    q = qkv[:, :, 0].transpose(0, 2, 1, 3)                    # (B, H, T, hd) bf16
    k = qkv[:, :, 1].transpose(0, 2, 1, 3)
    v = qkv[:, :, 2].transpose(0, 2, 1, 3)

    y = flash_attention(q, k, v)                              # (B, H, T, hd) bf16
    y = y.transpose(0, 2, 1, 3).reshape(B * T, C)             # merge heads (bf16)

    out = linear(y, w_proj_bf, b_proj_bf, out_dtype=x.dtype)  # (B*T, C) f32
    return out.reshape(B, T, C)


def reference_attention(x, w_qkv, b_qkv, w_proj, b_proj, n_head):
    """Pure-JAX f32 reference of the PyTorch forward (eval mode)."""
    B, T, C = x.shape
    hd = C // n_head
    qkv = x @ w_qkv + b_qkv                                  # (B, T, 3C)
    q, k, v = jnp.split(qkv, 3, axis=-1)

    def to_heads(t):
        return t.reshape(B, T, n_head, hd).transpose(0, 2, 1, 3)

    q, k, v = to_heads(q), to_heads(k), to_heads(v)
    scores = jnp.einsum('bhtd,bhsd->bhts', q, k) / math.sqrt(hd)
    mask = jnp.tril(jnp.ones((T, T), dtype=bool))
    scores = jnp.where(mask[None, None], scores, -jnp.inf)
    att = jax.nn.softmax(scores, axis=-1)
    y = jnp.einsum('bhts,bhsd->bhtd', att, v)
    y = y.transpose(0, 2, 1, 3).reshape(B, T, C)
    return y @ w_proj + b_proj


if __name__ == "__main__":
    # Small config consistent with the module (n_embd divisible by n_head),
    # but big enough to exercise multi-tile flash attention + causal skipping.
    B, T, C, n_head = 2, 256, 256, 4

    key = jax.random.PRNGKey(0)
    kx, k1, k2, k3, k4 = jax.random.split(key, 5)

    x = jax.random.normal(kx, (B, T, C), dtype=jnp.float32)

    # nn.Linear(C, 3C): weight (3C, C), bias (3C,). Pre-transposed to (C, 3C).
    bound_attn = 1.0 / math.sqrt(C)
    w_qkv = jax.random.uniform(k1, (C, 3 * C), jnp.float32, -bound_attn, bound_attn)
    b_qkv = jax.random.uniform(k2, (1, 3 * C), jnp.float32, -bound_attn, bound_attn)

    # nn.Linear(C, C): weight (C, C), bias (C,). Pre-transposed to (C, C).
    bound_proj = 1.0 / math.sqrt(C)
    w_proj = jax.random.uniform(k3, (C, C), jnp.float32, -bound_proj, bound_proj)
    b_proj = jax.random.uniform(k4, (1, C), jnp.float32, -bound_proj, bound_proj)

    out = causal_self_attention(x, w_qkv, b_qkv, w_proj, b_proj, n_head)
    out = jax.block_until_ready(out)

    ref = reference_attention(x, w_qkv, b_qkv, w_proj, b_proj, n_head)
    assert out.shape == (B, T, C)
    # bf16 activations/weights with f32 accumulation -> loosen tolerance vs f32 ref.
    assert jnp.allclose(out, ref, atol=2.5e-2, rtol=2.5e-2), "mismatch vs reference"

    print("KERNEL_OK")
</pallas_src>

<mosaic_0001>
module attributes {stable_mosaic.version = 11 : i64} {
  func.func @_linear_kernel(%arg0: i32, %arg1: i32, %arg2: i32, %arg3: memref<256x256xbf16, #tpu.memory_space<vmem>>, %arg4: memref<256x256xbf16, #tpu.memory_space<vmem>>, %arg5: memref<1x256xbf16, #tpu.memory_space<vmem>>, %arg6: memref<256x256xbf16, #tpu.memory_space<vmem>>, %arg7: memref<256x256xf32, #tpu.memory_space<vmem>>) attributes {dimension_semantics = [#tpu.dimension_semantics<parallel>, #tpu.dimension_semantics<parallel>, #tpu.dimension_semantics<arbitrary>], iteration_bounds = array<i64: 2, 3, 1>, scalar_prefetch = 0 : i64, scratch_operands = 1 : i64, tpu.core_type = #tpu.core_type<tc>, window_params = [{transform_indices = @transform_0, window_bounds = array<i64: 256, 256>}, {transform_indices = @transform_1, window_bounds = array<i64: 256, 256>}, {transform_indices = @transform_2, window_bounds = array<i64: 1, 256>}, {transform_indices = @transform_3, window_bounds = array<i64: 256, 256>}]} {
    %c0_i32 = arith.constant 0 : i32
    %0 = arith.cmpi eq, %arg2, %c0_i32 : i32
    %1 = arith.extui %0 : i1 to i32
    %c0_i32_0 = arith.constant 0 : i32
    %2 = arith.cmpi ne, %1, %c0_i32_0 : i32
    scf.if %2 {
      %cst_10 = arith.constant 0.000000e+00 : f32
      %12 = vector.broadcast %cst_10 : f32 to vector<256x256xf32>
      %c0_11 = arith.constant 0 : index
      %c0_12 = arith.constant 0 : index
      %13 = vector.load %arg7[%c0_11, %c0_12] : memref<256x256xf32, #tpu.memory_space<vmem>>, vector<256x256xf32>
      tpu.vector_store %arg7[%c0_11, %c0_12], %12 {strides = array<i32>} : memref<256x256xf32, #tpu.memory_space<vmem>>, vector<256x256xf32>,
    } else {
    }
    %c0 = arith.constant 0 : index
    %c0_1 = arith.constant 0 : index
    %3 = vector.load %arg7[%c0, %c0_1] : memref<256x256xf32, #tpu.memory_space<vmem>>, vector<256x256xf32>
    %c0_2 = arith.constant 0 : index
    %c0_3 = arith.constant 0 : index
    %4 = vector.load %arg3[%c0_2, %c0_3] : memref<256x256xbf16, #tpu.memory_space<vmem>>, vector<256x256xbf16>
    %c0_4 = arith.constant 0 : index
    %c0_5 = arith.constant 0 : index
    %5 = vector.load %arg4[%c0_4, %c0_5] : memref<256x256xbf16, #tpu.memory_space<vmem>>, vector<256x256xbf16>
    %cst = arith.constant dense<0.000000e+00> : vector<256x256xf32>
    %6 = tpu.matmul %4, %5, %cst {dimension_numbers = #tpu.dot_dimension_numbers<[1], [0], [0], [1], [0, 0, 1, 1], [], []>} : vector<256x256xbf16>, vector<256x256xbf16>, vector<256x256xf32> -> vector<256x256xf32>
    %7 = arith.addf %3, %6 : vector<256x256xf32>
    %c0_6 = arith.constant 0 : index
    %c0_7 = arith.constant 0 : index
    %8 = vector.load %arg7[%c0_6, %c0_7] : memref<256x256xf32, #tpu.memory_space<vmem>>, vector<256x256xf32>
    tpu.vector_store %arg7[%c0_6, %c0_7], %7 {strides = array<i32>} : memref<256x256xf32, #tpu.memory_space<vmem>>, vector<256x256xf32>,
    %c0_i32_8 = arith.constant 0 : i32
    %9 = arith.cmpi eq, %arg2, %c0_i32_8 : i32
    %10 = arith.extui %9 : i1 to i32
    %c0_i32_9 = arith.constant 0 : i32
    %11 = arith.cmpi ne, %10, %c0_i32_9 : i32
    scf.if %11 {
      %c0_10 = arith.constant 0 : index
      %c0_11 = arith.constant 0 : index
      %12 = vector.load %arg7[%c0_10, %c0_11] : memref<256x256xf32, #tpu.memory_space<vmem>>, vector<256x256xf32>
      %c0_12 = arith.constant 0 : index
      %c0_13 = arith.constant 0 : index
      %13 = vector.load %arg5[%c0_12, %c0_13] : memref<1x256xbf16, #tpu.memory_space<vmem>>, vector<1x256xbf16>
      %14 = arith.extf %13 : vector<1x256xbf16> to vector<1x256xf32>
      %15 = vector.broadcast %14 : vector<1x256xf32> to vector<256x256xf32>
      %16 = arith.addf %12, %15 : vector<256x256xf32>
      %17 = arith.truncf %16 : vector<256x256xf32> to vector<256x256xbf16>
      %c0_14 = arith.constant 0 : index
      %c0_15 = arith.constant 0 : index
      %18 = vector.load %arg6[%c0_14, %c0_15] : memref<256x256xbf16, #tpu.memory_space<vmem>>, vector<256x256xbf16>
      tpu.vector_store %arg6[%c0_14, %c0_15], %17 {strides = array<i32>} : memref<256x256xbf16, #tpu.memory_space<vmem>>, vector<256x256xbf16>,
    } else {
    }
    return
  }
  func.func @transform_0(%arg0: i32, %arg1: i32, %arg2: i32) -> (i32, i32) {
    %c0_i32 = arith.constant 0 : i32
    return %arg0, %arg2 : i32, i32
  }
  func.func @transform_1(%arg0: i32, %arg1: i32, %arg2: i32) -> (i32, i32) {
    %c0_i32 = arith.constant 0 : i32
    return %arg2, %arg1 : i32, i32
  }
  func.func @transform_2(%arg0: i32, %arg1: i32, %arg2: i32) -> (i32, i32) {
    %c0_i32 = arith.constant 0 : i32
    %c0_i32_0 = arith.constant 0 : i32
    return %c0_i32, %arg1 : i32, i32
  }
  func.func @transform_3(%arg0: i32, %arg1: i32, %arg2: i32) -> (i32, i32) {
    %c0_i32 = arith.constant 0 : i32
    return %arg0, %arg1 : i32, i32
  }
}

</mosaic_0001>

<bundles_post_ra>
// kernel: tpu_custom_call.1
= control target key start
LH: loop header
LB: loop body
LE: loop exit
PB: predicated region body
PF: predicated region fallthrough
CT: control target
= control target key end

     0   :  { %s2832_s0 = inlined_call_operand.hbm [shape: bf16[512,256], index: 0, kind: input, shape index: {}]   ;;  %s2833_s1 = inlined_call_operand.hbm [shape: bf16[256,768], index: 1, kind: input, shape index: {}]   ;;  %s2834_s2 = inlined_call_operand.vmem [shape: bf16[1,768], index: 2, kind: input, shape index: {}]   ;;  %s2835_s3 = inlined_call_operand.hbm [shape: bf16[512,768], index: 3, kind: output, shape index: {}]  }
   0x1   :  { %2849 = sst [smem:[#allocation18_spill]] %s2832_s0 }
   0x2   :  { %2850 = sst [smem:[#allocation19_spill]] %s2834_s2 }
   0x3   :  { %2851 = sst [smem:[#allocation20_spill]] %s2835_s3 }
   0x4   :  { %8 = vsyncpa [#allocation4], 0 }
   0x5   :  { %10 = vsyncpa [#allocation4 + $0x1], 0 }
   0x6   :  { %11 = vsyncpa [#allocation7], 0 }
   0x7   :  { %13 = vsyncpa [#allocation7 + $0x1], 0 }
   0x8   :  { %14 = vsyncpa [#allocation5], 0 }
   0x9   :  { %16 = vsyncpa [#allocation5 + $0x1], 0  ;;  %s2304_s12 = smov 0   ;;  %s2306_s13 = smov 0  }
   0xa   :  { %s2308_s14 = smov 0   ;;  %s2310_s15 = smov 0  }
   0xb   :  { %s2312_s16 = smov 0   ;;  %s2314_s17 = smov 0  }
   0xc   :  { %s2316_s18 = smov 0   ;;  %s2318_s19 = smov 0  }
   0xd   :  { %s2320_s20 = smov 0   ;;  %s2322_s21 = smov 0  }
   0xe   :  { %s2324_s22 = smov 0   ;;  %s2326_s23 = smov 0  }
   0xf   :  { %s2328_s24 = smov 0   ;;  %s2330_s25 = smov 0  }
  0x10 LB: > { %2852 = sst [smem:[#allocation12_spill]] %s2261_s22  ;;  %s1643_s26 = sadd.s32 4294967295, %s2273_s25   ;;  %s2273_s25 = sphi %s2330_s25, %s22_s25   ;;  %s2269_s24 = sphi %s2328_s24, %s2888_s24   ;;  %s2265_s23 = sphi %s2326_s23, %s2899_s23   ;;  %s2261_s22 = sphi %s2324_s22, %s2886_s22   ;;  %s2257_s21 = sphi %s2322_s21, %s2898_s21   ;;  %s2253_s20 = sphi %s2320_s20, %s2897_s20   ;;  %s2249_s19 = sphi %s2318_s19, %s2896_s19   ;;  %s2245_s18 = sphi %s2316_s18, %s2895_s18   ;;  %s2241_s17 = sphi %s2314_s17, %s2894_s17   ;;  %s2237_s16 = sphi %s2312_s16, %s2893_s16   ;;  %s2233_s15 = sphi %s2310_s15, %s2892_s15   ;;  %s2229_s14 = sphi %s2308_s14, %s2891_s14   ;;  %s2225_s13 = sphi %s2306_s13, %s2890_s13   ;;  %s2221_s12 = sphi %s2304_s12, %s2889_s12  }
  0x11   : > { %2853 = sst [smem:[#allocation13_spill]] %s2269_s24  ;;  %p57_p0 = scmp.ne.s32.totalorder %s2253_s20, %s2249_s19 }
  0x12   : > { %p2837_p1 = scmp.eq.s32.totalorder %s2273_s25, 0  ;;  %p63_p2 = scmp.ne.s32.totalorder %s2249_s19, %s2245_s18 }
  0x13   : > { %p2379_p3 = scmp.eq.s32.totalorder %s1643_s26, 0  ;;  %p2383_p4 = scmp.eq.s32.totalorder %s1643_s26, 5 }
  0x14   : > { %p59_p5 = por %p2837_p1, %p57_p0  ;;  %p2836_p7 = scmp.lt.s32.totalorder %s2273_s25, 6 }
  0x15   : > { %s2855_s30 = scalar_select %p2383_p4, 1, 0 }
  0x16   : > { %p2391_p6 = por %p2379_p3, %p63_p2  ;;  %s169_s5 = sand.u32 1, %s2253_s20  }
  0x17   : > { %s1763_s6 = sshll.u32 %s2269_s24, 12  ;;  %s1647_s7 = sshll.u32 %s169_s5, 8 }
  0x18   : > { %s2856_s4 = scalar_select %p2391_p6, 1, 0 }
  0x19   : > { %s2857_s0 = sld [smem:[#allocation18_spill]]  ;;  %s173_s11 = scalar_lea.vmem [#allocation3], %s1647_s7 }
  0x1a   : > { %s183_s18 = sshll.u32 %s173_s11, 4  ;;  %p2405_p8 = pnand %p2836_p7, %p59_p5  ;;  %s2409_s18 = int_to_ptr.vmem [resolvable:$true] %s183_s18 }
  0x1b   : > { %s2411_s28 = scalar_lea.sflag [#allocation4], %s169_s5 }
  0x1c   : > { %p2065_p10 = pneg %p2405_p8 }
  0x1f   : > { %s2401_s10 = scalar_lea.hbm %s2857_s0, %s1763_s6  ;;  %s2068_s9 = scalar_lea.hbm %s2857_s0, 8192 }
  0x20   : > { %s2063_s8 = scalar_lea.hbm %s2401_s10, 4096  ;;  %p2069_p13 = scmp.lt.u32.totalorder %s2401_s10, %s2857_s0 }
  0x21   : > { %p2064_p9 = scmp.ne.s32.totalorder %s2401_s10, %s2063_s8  ;;  %p2070_p0 = scmp.lt.u32.totalorder %s2068_s9, %s2063_s8 }
  0x22   : > { %p2072_p5 = scmp.lt.u32.totalorder %s2063_s8, %s2401_s10 }
  0x23   : > { %p2066_p11 = pnand %p2065_p10, %p2064_p9  ;;  %p2071_p2 = por %p2070_p0, %p2069_p13 }
  0x25   : > { %p2067_p12 = pneg %p2066_p11  ;;  %p2073_p7 = por %p2072_p5, %p2071_p2 }
  0x27   : > { %p2074_p1 = pnand %p2073_p7, %p2067_p12 }
  0x29   : > { %2077 = shalt.err (!%p2074_p1)
}
  0x2a   : > { %s2078_s5 = scalar_lea.vmem %s2409_s18, 4096  ;;  %s2275_s6 = smov [#allocation3]  }
  0x2b   : > { %p2079_p9 = scmp.ne.s32.totalorder %s2409_s18, %s2078_s5  ;;  %s2083_s7 = sshll.u32 %s2275_s6, 4  ;;  %s2084_s7 = int_to_ptr.vmem [resolvable:$false] %s2083_s7 }
  0x2c   : > { %s2085_s27 = scalar_lea.vmem %s2084_s7, 8192  ;;  %p2086_p4 = scmp.lt.s32.totalorder %s2409_s18, %s2084_s7 }
  0x2d   : > { %p2081_p11 = pnand %p2079_p9, %p2065_p10  ;;  %p2087_p13 = scmp.lt.s32.totalorder %s2085_s27, %s2078_s5 }
  0x2f   : > { %p2082_p6 = pneg %p2081_p11  ;;  %p2088_p0 = por %p2087_p13, %p2086_p4 }
  0x31   : > { %p2089_p2 = pnand %p2088_p0, %p2082_p6 }
  0x33   : > { %2092 = shalt.err (!%p2089_p2)
}
  0x34   : > { %s2839_s8 = smov 128   ;;  %s2840_s9 = smov 8  }
  0x35   : > { %1839 = dma.hbm_to_vmem [thread:$0]  (!%p2405_p8), %s2401_s10, 4096, %s2409_s18, %s2411_s28, %s2839_s8, %s2839_s8, %s2840_s9  }
  0x36   : > { %p1654_p1 = scmp.ge.s32.totalorder %s2273_s25, 1  ;;  %p223_p4 = scmp.lt.s32.totalorder %s2273_s25, 7 }
  0x37   : > { %s1644_s5 = sadd.s32 4294967294, %s2273_s25   ;;  %s37_s6 = sadd.s32 1, %s2265_s23 }
  0x38   : > { %p2444_p6 = pnand %p1654_p1, %p223_p4  ;;  %s78_s7 = sadd.s32 1, %s2241_s17 }
  0x39   : > { %p39_p7 = scmp.ge.s32.totalorder %s37_s6, 3  ;;  %p85_p10 = scmp.ne.s32.totalorder %s2241_s17, %s2237_s16 }
  0x3a   : > { %p91_p12 = scmp.ne.s32.totalorder %s2237_s16, %s2233_s15  ;;  %s132_s26 = sadd.s32 1, %s2229_s14 }
  0x3b   : > { %s2901_s6 = smov (%p39_p7, %s37_s6), 0  ;;  %s2861_s28 = sadd.s32 1, %s2269_s24 }
  0x3c   : > { %2860 = sst [smem:[#allocation14_spill]] %s2901_s6  ;;  %s2903_s28 = smov (!%p39_p7, %s2861_s28), %s2269_s24 }
  0x3d   : > { %s74_s10 = ssub.s32 %s2265_s23, %s2901_s6  ;;  %p2862_p8 = scmp.eq.s32.totalorder %s2273_s25, 0 }
  0x3e   : > { %p43_p9 = scmp.ge.s32.totalorder %s2903_s28, 2  ;;  %p76_p11 = scmp.eq.s32.totalorder %s74_s10, 0 }
  0x3f   : > { %p2465_p5 = por %p85_p10, %p2862_p8  ;;  %p2471_p13 = por %p91_p12, %p2379_p3 }
  0x40   : > { %p142_p0 = scmp.ne.s32.totalorder %s2229_s14, %s2225_s13  ;;  %s2905_s28 = smov (%p43_p9, %s2903_s28), 0 }
  0x41   : > { %s2864_s15 = scalar_select %p2471_p13, 1, 0 }
  0x42   : > { %2865 = sst [smem:[#allocation15_spill]] %s2905_s28  ;;  %s45_s8 = ssub.s32 %s2269_s24, %s2905_s28 }
  0x43   : > { %s2480_s27 = scalar_select %p76_p11, %s2241_s17, %s78_s7  }
  0x44   : > { %p2867_p2 = scmp.ne.s32.totalorder %s2855_s30, 0  ;;  %p48_p4 = scmp.eq.s32.totalorder %s45_s8, 0 }
  0x45   : > { %2866 = sst [smem:[#allocation16_spill]] %s2480_s27  ;;  %s129_s29 = sor.u32 %s74_s10, %s45_s8 }
  0x46   : > { %p2486_p1 = por %p2867_p2, %p142_p0  ;;  %p130_p3 = scmp.eq.s32.totalorder %s129_s29, 0 }
  0x47   : > { %p148_p7 = scmp.ne.s32.totalorder %s2225_s13, %s2221_s12  ;;  %s2870_s0 = sadd.s32 1, %s2253_s20 }
  0x48   : > { %s2868_s9 = scalar_select %p2486_p1, 1, 0 }
  0x49   : > { %s2495_s6 = scalar_select %p48_p4, %s2253_s20, %s2870_s0  }
  0x4a   : > { %2869 = sst [smem:[#allocation17_spill]] %s2868_s9  ;;  %p149_p10 = scmp.eq.s32.totalorder %s1644_s5, 5 }
  0x4b   : > { %s2498_s3 = scalar_select %p130_p3, %s2229_s14, %s132_s26  }
  0x4c   : > { %s193_s7 = sand.u32 1, %s2241_s17   ;;  %p2501_p12 = por %p149_p10, %p148_p7 }
  0x4d   : > { %s1651_s27 = sshll.u32 %s193_s7, 8  ;;  %s1764_s28 = sshll.u32 %s2265_s23, 7 }
  0x4e   : > { %s2871_s30 = scalar_select %p2501_p12, 1, 0 }
  0x4f   : > { %s197_s24 = scalar_lea.vmem [#allocation6], %s1651_s27  ;;  %s2509_s8 = scalar_lea.hbm %s2833_s1, %s1764_s28 }
  0x50   : > { %s207_s9 = sshll.u32 %s197_s24, 4  ;;  %p2872_p8 = scmp.lt.s32.totalorder %s2273_s25, 6  ;;  %s2511_s9 = int_to_ptr.vmem [resolvable:$true] %s207_s9 }
  0x51   : > { %s2521_s24 = scalar_lea.sflag [#allocation7], %s193_s7  ;;  %s2093_s5 = scalar_lea.hbm %s2509_s8, 4096 }
  0x52   : > { %p2517_p9 = pnand %p2872_p8, %p2465_p5  ;;  %p2094_p11 = scmp.ne.s32.totalorder %s2509_s8, %s2093_s5 }
  0x53   : > { %s2098_s26 = scalar_lea.hbm %s2833_s1, 12288  ;;  %p2099_p5 = scmp.lt.u32.totalorder %s2509_s8, %s2833_s1 }
  0x54   : > { %p2095_p0 = pneg %p2517_p9  ;;  %p2100_p3 = scmp.lt.u32.totalorder %s2098_s26, %s2093_s5 }
  0x55   : > { %p2102_p10 = scmp.lt.u32.totalorder %s2093_s5, %s2509_s8 }
  0x56   : > { %p2096_p2 = pnand %p2095_p0, %p2094_p11  ;;  %p2101_p7 = por %p2100_p3, %p2099_p5 }
  0x58   : > { %p2097_p4 = pneg %p2096_p2  ;;  %p2103_p8 = por %p2102_p10, %p2101_p7 }
  0x5a   : > { %p2104_p12 = pnand %p2103_p8, %p2097_p4 }
  0x5c   : > { %2107 = shalt.err (!%p2104_p12)
}
  0x5d   : > { %s2108_s18 = scalar_lea.vmem %s2511_s9, 4096  ;;  %s2278_s27 = smov [#allocation6]  }
  0x5e   : > { %p2109_p11 = scmp.ne.s32.totalorder %s2511_s9, %s2108_s18  ;;  %s2113_s29 = sshll.u32 %s2278_s27, 4  ;;  %s2114_s29 = int_to_ptr.vmem [resolvable:$false] %s2113_s29 }
  0x5f   : > { %s2115_s7 = scalar_lea.vmem %s2114_s29, 8192  ;;  %p2116_p13 = scmp.lt.s32.totalorder %s2511_s9, %s2114_s29 }
  0x60   : > { %p2111_p2 = pnand %p2109_p11, %p2095_p0  ;;  %p2117_p5 = scmp.lt.s32.totalorder %s2115_s7, %s2108_s18 }
  0x62   : > { %p2112_p1 = pneg %p2111_p2  ;;  %p2118_p3 = por %p2117_p5, %p2116_p13 }
  0x64   : > { %p2119_p7 = pnand %p2118_p3, %p2112_p1 }
  0x66   : > { %2122 = shalt.err (!%p2119_p7)
}
  0x67   : > { %s2279_s5 = smov 384   ;;  %s2874_s2 = smov 8  }
  0x68   : > { %s2875_s22 = smov 128   ;;  %227 = sbr.rel (%p2444_p6) target bundleno = 472 (0x1d8), region = 32 }
  0x69   : > { %1842 = dma.hbm_to_vmem [thread:$0]  (!%p2517_p9), %s2509_s8, 4096, %s2511_s9, %s2521_s24, %s2279_s5, %s2875_s22, %s2874_s2  }
  0x6a   : > { %s229_s26 = sand.u32 (!%p2444_p6), 1, %s2249_s19   ;;  %p2876_p13 = scmp.ne.s32.totalorder (!%p2444_p6), %s2856_s4, 0 }
  0x6b   : > { %s1655_s28 = sshll.u32 (!%p2444_p6), %s229_s26, 8  ;;  %s230_s10 = scalar_lea.sflag (!%p2444_p6), [#allocation4], %s229_s26 }
  0x6c   : > { %s2554_s18 = scalar_lea.vmem (!%p2444_p6), [#allocation3], %s1655_s28 }
  0x6f   : > { %2208 = dma.done.wait (%p2876_p13), %s230_s10, 4096  }
  0x70   : > { %2210 = vsyncadd (%p2876_p13), %s230_s10, 4294963200  ;;  %s238_s0 = sand.u32 1, %s2237_s16   ;;  %p2877_p6 = scmp.ne.s32.totalorder %s2864_s15, 0 }
  0x71   : > { %s1656_s27 = sshll.u32 %s238_s0, 8  ;;  %s239_s9 = scalar_lea.sflag [#allocation7], %s238_s0 }
  0x72   : > { %s2561_s8 = scalar_lea.vmem [#allocation6], %s1656_s27 }
  0x73   : > { %2212 = dma.done.wait (%p2877_p6), %s239_s9, 4096  }
  0x74   : > { %2214 = vsyncadd (%p2877_p6), %s239_s9, 4294963200  ;;  %v1967_v0 = vld [vmem:[%s2561_s8 + $0x4] ss:$8 sps:$4 sm:$0xff]   ;;  %v1969_v1 = vld [vmem:[%s2561_s8] ss:$8 sps:$4 sm:$0xff]   ;;  %s2632_s4 = sshll.u32 %s2257_s21, 1 }
  0x75   : > { %801 = vmatprep.subr.bf16.mxu0 %v1967_v0  ;;  %1797 = vmatprep.subr.bf16.mxu1 %v1967_v0  ;;  %v1970_v2 = vld [vmem:[%s2561_s8 + $0x14] ss:$8 sps:$4 sm:$0xff]   ;;  %v1972_v3 = vld [vmem:[%s2561_s8 + $0x10] ss:$8 sps:$4 sm:$0xff]   ;;  %v1973_v4 = vld [vmem:[%s2561_s8 + $0x24] ss:$8 sps:$4 sm:$0xff]   ;;  %v1192_v0 = vlaneseq }
  0x76   : > { %802 = vmatpush1.bf16.msra.mxu0 %v1969_v1  ;;  %1813 = vmatpush1.bf16.msra.mxu1 %v1969_v1  ;;  %v1975_v5 = vld [vmem:[%s2561_s8 + $0x20] ss:$8 sps:$4 sm:$0xff]   ;;  %v1976_v6 = vld [vmem:[%s2561_s8 + $0x34] ss:$8 sps:$4 sm:$0xff]   ;;  %v1978_v7 = vld [vmem:[%s2561_s8 + $0x30] ss:$8 sps:$4 sm:$0xff]  }
  0x77   : > { %803 = vmatprep.subr.bf16.mxu0 %v1970_v2  ;;  %1798 = vmatprep.subr.bf16.mxu1 %v1970_v2  ;;  %v1979_v8 = vld [vmem:[%s2561_s8 + $0x44] ss:$8 sps:$4 sm:$0xff]   ;;  %v1981_v9 = vld [vmem:[%s2561_s8 + $0x40] ss:$8 sps:$4 sm:$0xff]   ;;  %v1982_v10 = vld [vmem:[%s2561_s8 + $0x54] ss:$8 sps:$4 sm:$0xff]  }
  0x78   : > { %v1984_v11 = vld [vmem:[%s2561_s8 + $0x50] ss:$8 sps:$4 sm:$0xff]   ;;  %v1985_v12 = vld [vmem:[%s2561_s8 + $0x64] ss:$8 sps:$4 sm:$0xff]   ;;  %v1987_v14 = vld [vmem:[%s2561_s8 + $0x60] ss:$8 sps:$4 sm:$0xff]  }
  0x79   : > { %v2017_v13 = vld [vmem:[%s2554_s18 + $0x4] ss:$8 sps:$4 sm:$0xff]   ;;  %v1988_v16 = vld [vmem:[%s2561_s8 + $0x74] ss:$8 sps:$4 sm:$0xff]   ;;  %v1990_v17 = vld [vmem:[%s2561_s8 + $0x70] ss:$8 sps:$4 sm:$0xff]  }
  0x7a   : > { %804 = vmatpush1.bf16.msra.mxu0 %v1972_v3  ;;  %1814 = vmatpush1.bf16.msra.mxu1 %v1972_v3  ;;  %v2020_v15 = vld [vmem:[%s2554_s18 + $0x84] ss:$8 sps:$4 sm:$0xff]   ;;  %v1993_v19 = vld [vmem:[%s2561_s8 + $0x80] ss:$8 sps:$4 sm:$0xff]   ;;  %v1994_v20 = vld [vmem:[%s2561_s8 + $0x94] ss:$8 sps:$4 sm:$0xff]  }
  0x7b   : > { %805 = vmatprep.subr.bf16.mxu0 %v1973_v4  ;;  %1799 = vmatprep.subr.bf16.mxu1 %v1973_v4  ;;  %v1991_v18 = vld [vmem:[%s2561_s8 + $0x84] ss:$8 sps:$4 sm:$0xff]   ;;  %v1996_v21 = vld [vmem:[%s2561_s8 + $0x90] ss:$8 sps:$4 sm:$0xff]   ;;  %v1999_v23 = vld [vmem:[%s2561_s8 + $0xa0] ss:$8 sps:$4 sm:$0xff]  }
  0x7c   : > { %833 = vmatprep.mubr.bf16.mxu0 %v2017_v13  ;;  %913 = vmatprep.mubr.bf16.mxu1 %v2020_v15  ;;  %v1997_v22 = vld [vmem:[%s2561_s8 + $0xa4] ss:$8 sps:$4 sm:$0xff]   ;;  %v2000_v24 = vld [vmem:[%s2561_s8 + $0xb4] ss:$8 sps:$4 sm:$0xff]   ;;  %v2002_v25 = vld [vmem:[%s2561_s8 + $0xb0] ss:$8 sps:$4 sm:$0xff]  }
  0x7d   : > { %v2003_v26 = vld [vmem:[%s2561_s8 + $0xc4] ss:$8 sps:$4 sm:$0xff]   ;;  %v2005_v27 = vld [vmem:[%s2561_s8 + $0xc0] ss:$8 sps:$4 sm:$0xff]   ;;  %v2006_v28 = vld [vmem:[%s2561_s8 + $0xd4] ss:$8 sps:$4 sm:$0xff]  }
  0x7e   : > { %806 = vmatpush1.bf16.msra.mxu0 %v1975_v5  ;;  %1815 = vmatpush1.bf16.msra.mxu1 %v1975_v5  ;;  %v2008_v29 = vld [vmem:[%s2561_s8 + $0xd0] ss:$8 sps:$4 sm:$0xff]   ;;  %v2009_v30 = vld [vmem:[%s2561_s8 + $0xe4] ss:$8 sps:$4 sm:$0xff]   ;;  %v2011_v31 = vld [vmem:[%s2561_s8 + $0xe0] ss:$8 sps:$4 sm:$0xff]  }
  0x7f   : > { %807 = vmatprep.subr.bf16.mxu0 %v1976_v6  ;;  %1800 = vmatprep.subr.bf16.mxu1 %v1976_v6  ;;  %v2012_v32 = vld [vmem:[%s2561_s8 + $0xf4] ss:$8 sps:$4 sm:$0xff]   ;;  %v2014_v33 = vld [vmem:[%s2561_s8 + $0xf0] ss:$8 sps:$4 sm:$0xff]   ;;  %v2015_v34 = vld [vmem:[%s2554_s18] ss:$8 sps:$4 sm:$0xff]  }
  0x80   : > { %v2018_v35 = vld [vmem:[%s2554_s18 + $0x80] ss:$8 sps:$4 sm:$0xff]   ;;  %v2021_v36 = vld [vmem:[%s2554_s18 + $0x14] ss:$8 sps:$4 sm:$0xff]   ;;  %v2025_v38 = vld [vmem:[%s2554_s18 + $0x10] ss:$8 sps:$4 sm:$0xff]  }
  0x81   : > { %v2023_v37 = vld [vmem:[%s2554_s18 + $0x94] ss:$8 sps:$4 sm:$0xff]   ;;  %v2026_v39 = vld [vmem:[%s2554_s18 + $0x90] ss:$8 sps:$4 sm:$0xff]   ;;  %v2027_v40 = vld [vmem:[%s2554_s18 + $0x24] ss:$8 sps:$4 sm:$0xff]  }
  0x82   : > { %808 = vmatpush1.bf16.msra.mxu0 %v1978_v7  ;;  %1816 = vmatpush1.bf16.msra.mxu1 %v1978_v7  ;;  %v2029_v41 = vld [vmem:[%s2554_s18 + $0xa4] ss:$8 sps:$4 sm:$0xff]   ;;  %v2031_v42 = vld [vmem:[%s2554_s18 + $0x20] ss:$8 sps:$4 sm:$0xff]   ;;  %v2033_v44 = vld [vmem:[%s2554_s18 + $0x34] ss:$8 sps:$4 sm:$0xff]  }
  0x83   : > { %809 = vmatprep.subr.bf16.mxu0 %v1979_v8  ;;  %1801 = vmatprep.subr.bf16.mxu1 %v1979_v8  ;;  %v2032_v43 = vld [vmem:[%s2554_s18 + $0xa0] ss:$8 sps:$4 sm:$0xff]   ;;  %v2035_v45 = vld [vmem:[%s2554_s18 + $0xb4] ss:$8 sps:$4 sm:$0xff]   ;;  %v2037_v46 = vld [vmem:[%s2554_s18 + $0x30] ss:$8 sps:$4 sm:$0xff]  }
  0x84   : > { %v2038_v47 = vld [vmem:[%s2554_s18 + $0xb0] ss:$8 sps:$4 sm:$0xff]   ;;  %v2039_v48 = vld [vmem:[%s2554_s18 + $0x44] ss:$8 sps:$4 sm:$0xff]   ;;  %v2043_v50 = vld [vmem:[%s2554_s18 + $0x40] ss:$8 sps:$4 sm:$0xff]  }
  0x85   : > { %v2041_v49 = vld [vmem:[%s2554_s18 + $0xc4] ss:$8 sps:$4 sm:$0xff]   ;;  %v2044_v51 = vld [vmem:[%s2554_s18 + $0xc0] ss:$8 sps:$4 sm:$0xff]   ;;  %v2045_v52 = vld [vmem:[%s2554_s18 + $0x54] ss:$8 sps:$4 sm:$0xff]  }
  0x86   : > { %810 = vmatpush1.bf16.msra.mxu0 %v1981_v9  ;;  %1817 = vmatpush1.bf16.msra.mxu1 %v1981_v9  ;;  %v2047_v53 = vld [vmem:[%s2554_s18 + $0xd4] ss:$8 sps:$4 sm:$0xff]   ;;  %v2049_v54 = vld [vmem:[%s2554_s18 + $0x50] ss:$8 sps:$4 sm:$0xff]   ;;  %v2051_v56 = vld [vmem:[%s2554_s18 + $0x64] ss:$8 sps:$4 sm:$0xff]  }
  0x87   : > { %811 = vmatprep.subr.bf16.mxu0 %v1982_v10  ;;  %1802 = vmatprep.subr.bf16.mxu1 %v1982_v10  ;;  %v2050_v55 = vld [vmem:[%s2554_s18 + $0xd0] ss:$8 sps:$4 sm:$0xff]   ;;  %v2053_v57 = vld [vmem:[%s2554_s18 + $0xe4] ss:$8 sps:$4 sm:$0xff]   ;;  %v2055_v58 = vld [vmem:[%s2554_s18 + $0x60] ss:$8 sps:$4 sm:$0xff]  }
  0x88   : > { %v2056_v59 = vld [vmem:[%s2554_s18 + $0xe0] ss:$8 sps:$4 sm:$0xff]   ;;  %v2057_v60 = vld [vmem:[%s2554_s18 + $0x74] ss:$8 sps:$4 sm:$0xff]   ;;  %v2061_v62 = vld [vmem:[%s2554_s18 + $0x70] ss:$8 sps:$4 sm:$0xff]  }
  0x89   : > { %v2059_v61 = vld [vmem:[%s2554_s18 + $0xf4] ss:$8 sps:$4 sm:$0xff]   ;;  %v2062_v63 = vld [vmem:[%s2554_s18 + $0xf0] ss:$8 sps:$4 sm:$0xff]   ;;  %p279_p1 = scmp.lt.s32.totalorder %s2632_s4, 5  ;;  %s2878_s29 = sld [smem:[#allocation19_spill]] }
  0x8a   : > { %812 = vmatpush1.bf16.msra.mxu0 %v1984_v11  ;;  %1818 = vmatpush1.bf16.msra.mxu1 %v1984_v11  ;;  %v1193_v1 = vshrl.u32 %v1192_v0, 7  ;;  %s271_s21 = sand.u32 1, %s2225_s13   ;;  %s2879_s22 = sld [smem:[#allocation12_spill]] }
  0x8b   : > { %813 = vmatprep.subr.bf16.mxu0 %v1985_v12  ;;  %1803 = vmatprep.subr.bf16.mxu1 %v1985_v12  ;;  %s280_s11 = scalar_select %p279_p1, %s2632_s4, 5 }
  0x8c   : > { %v1194_v4 = vsub.s32 0, %v1193_v1  ;;  %v1198_v5 = vsub.s32 2, %v1193_v1  ;;  %s1657_s5 = sshll.u32 %s271_s21, 8  ;;  %s2880_s0 = sld [smem:[#allocation17_spill]] }
  0x8d   : > { %s2654_s2 = scalar_lea.vmem [#allocation8], %s1657_s5  ;;  %s2881_s8 = sld [smem:[#allocation20_spill]] }
  0x8e   : > { %814 = vmatpush1.bf16.msra.mxu0 %v1987_v14  ;;  %1819 = vmatpush1.bf16.msra.mxu1 %v1987_v14  ;;  %s1515_s18 = sshll.u32 %s2654_s2, 4  ;;  %s2280_s24 = smov [#allocation8]   ;;  %s2748_s18 = int_to_ptr.vmem [resolvable:$true] %s1515_s18 }
  0x8f   : > { %815 = vmatprep.subr.bf16.mxu0 %v1988_v16  ;;  %1804 = vmatprep.subr.bf16.mxu1 %v1988_v16  ;;  %s281_s7 = scalar_lea.vmem %s2878_s29, %s280_s11  ;;  %s2756_s11 = scalar_lea.sflag [#allocation5], %s271_s21 }
  0x90   : > { %v1189_v2 = vld [vmem:[%s281_s7] sm:$0x3]  ;;  %s1829_s26 = smul.u32 192, %s2879_s22  ;;  %s2123_s15 = scalar_lea.vmem %s2748_s18, 4096 }
  0x91   : > { %v1190_v3 = vunpack.c.l.bf16 %v1189_v2  ;;  %p2124_p12 = scmp.ne.s32.totalorder %s2748_s18, %s2123_s15  ;;  %s2127_s29 = sshll.u32 %s2280_s24, 4  ;;  %s2128_s29 = int_to_ptr.vmem [resolvable:$false] %s2127_s29 }
  0x92   : > { %816 = vmatpush1.bf16.msra.mxu0 %v1990_v17  ;;  %1820 = vmatpush1.bf16.msra.mxu1 %v1990_v17  ;;  %s1512_s28 = sadd.s32 %s1829_s26, %s2632_s4  ;;  %p2882_p9 = scmp.ne.s32.totalorder %s2880_s0, 0 }
  0x93   : > { %817 = vmatprep.subr.bf16.mxu0 %v1991_v18  ;;  %1805 = vmatprep.subr.bf16.mxu1 %v1991_v18  ;;  %v1195_v6 = vrot.slane %v1190_v3, %v1194_v4  ;;  %v1199_v7 = vrot.slane %v1190_v3, %v1198_v5  ;;  %s1759_s10 = sshll.u32 %s1512_s28, 6  ;;  %s2129_s7 = scalar_lea.vmem %s2128_s29, 8192 }
  0x94   : > { %s2746_s4 = scalar_lea.hbm %s2881_s8, %s1759_s10  ;;  %p2125_p0 = pnand %p2124_p12, %p2882_p9 }
  0x95   : > { %v2639_v8 = vrot.slane %v1195_v6, %v1194_v4  ;;  %v2642_v9 = vrot.slane %v1199_v7, %v1194_v4  ;;  %p2130_p10 = scmp.lt.s32.totalorder %s2748_s18, %s2128_s29  ;;  %p2131_p8 = scmp.lt.s32.totalorder %s2129_s7, %s2123_s15 }
  0x96   : > { %818 = vmatpush1.bf16.msra.mxu0 %v1993_v19  ;;  %1821 = vmatpush1.bf16.msra.mxu1 %v1993_v19  ;;  %p2126_p4 = pneg %p2125_p0 }
  0x97   : > { %819 = vmatprep.subr.bf16.mxu0 %v1994_v20  ;;  %1806 = vmatprep.subr.bf16.mxu1 %v1994_v20  ;;  %p2132_p11 = por %p2131_p8, %p2130_p10 }
  0x99   : > { %p2133_p2 = pnand %p2132_p11, %p2126_p4 }
  0x9a   : > { %820 = vmatpush1.bf16.msra.mxu0 %v1996_v21  ;;  %1822 = vmatpush1.bf16.msra.mxu1 %v1996_v21 }
  0x9b   : > { %821 = vmatprep.subr.bf16.mxu0 %v1997_v22  ;;  %1807 = vmatprep.subr.bf16.mxu1 %v1997_v22 }
  0x9e   : > { %822 = vmatpush1.bf16.msra.mxu0 %v1999_v23  ;;  %1823 = vmatpush1.bf16.msra.mxu1 %v1999_v23 }
  0x9f   : > { %823 = vmatprep.subr.bf16.mxu0 %v2000_v24  ;;  %1808 = vmatprep.subr.bf16.mxu1 %v2000_v24 }
  0xa2   : > { %824 = vmatpush1.bf16.msra.mxu0 %v2002_v25  ;;  %1824 = vmatpush1.bf16.msra.mxu1 %v2002_v25 }
  0xa3   : > { %825 = vmatprep.subr.bf16.mxu0 %v2003_v26  ;;  %1809 = vmatprep.subr.bf16.mxu1 %v2003_v26 }
  0xa6   : > { %826 = vmatpush1.bf16.msra.mxu0 %v2005_v27  ;;  %1825 = vmatpush1.bf16.msra.mxu1 %v2005_v27 }
  0xa7   : > { %827 = vmatprep.subr.bf16.mxu0 %v2006_v28  ;;  %1810 = vmatprep.subr.bf16.mxu1 %v2006_v28 }
  0xaa   : > { %828 = vmatpush1.bf16.msra.mxu0 %v2008_v29  ;;  %1826 = vmatpush1.bf16.msra.mxu1 %v2008_v29 }
  0xab   : > { %829 = vmatprep.subr.bf16.mxu0 %v2009_v30  ;;  %1811 = vmatprep.subr.bf16.mxu1 %v2009_v30 }
  0xae   : > { %830 = vmatpush1.bf16.msra.mxu0 %v2011_v31  ;;  %1827 = vmatpush1.bf16.msra.mxu1 %v2011_v31 }
  0xaf   : > { %831 = vmatprep.subr.bf16.mxu0 %v2012_v32  ;;  %1812 = vmatprep.subr.bf16.mxu1 %v2012_v32 }
  0xb2   : > { %832 = vmatpush1.bf16.msra.mxu0 %v2014_v33  ;;  %1828 = vmatpush1.bf16.msra.mxu1 %v2014_v33 }
  0xb5   : > { %834 = vmatmul.mubr.bf16.vlgmr.msra.gmra.mrb[0].mxu0 %v2015_v34  ;;  %914 = vmatmul.mubr.bf16.vlgmr.msra.gmra.mrb[0].mxu1 %v2018_v35 }
  0xb6   : > { %843 = vmatprep.mubr.bf16.mxu0 %v2021_v36  ;;  %923 = vmatprep.mubr.bf16.mxu1 %v2023_v37 }
  0xbd   : > { %844 = vmatmul.mubr.bf16.gmra.mrb[4].mxu0 %v2025_v38  ;;  %924 = vmatmul.mubr.bf16.gmra.mrb[4].mxu1 %v2026_v39 }
  0xbe   : > { %853 = vmatprep.mubr.bf16.mxu0 %v2027_v40  ;;  %933 = vmatprep.mubr.bf16.mxu1 %v2029_v41 }
  0xc5   : > { %854 = vmatmul.mubr.bf16.gmra.mrb[8].mxu0 %v2031_v42  ;;  %934 = vmatmul.mubr.bf16.gmra.mrb[8].mxu1 %v2032_v43 }
  0xc6   : > { %863 = vmatprep.mubr.bf16.mxu0 %v2033_v44  ;;  %943 = vmatprep.mubr.bf16.mxu1 %v2035_v45 }
  0xcd   : > { %864 = vmatmul.mubr.bf16.gmra.mrb[12].mxu0 %v2037_v46  ;;  %944 = vmatmul.mubr.bf16.gmra.mrb[12].mxu1 %v2038_v47 }
  0xce   : > { %873 = vmatprep.mubr.bf16.mxu0 %v2039_v48  ;;  %953 = vmatprep.mubr.bf16.mxu1 %v2041_v49 }
  0xd5   : > { %874 = vmatmul.mubr.bf16.gmra.mrb[16].mxu0 %v2043_v50  ;;  %954 = vmatmul.mubr.bf16.gmra.mrb[16].mxu1 %v2044_v51 }
  0xd6   : > { %883 = vmatprep.mubr.bf16.mxu0 %v2045_v52  ;;  %963 = vmatprep.mubr.bf16.mxu1 %v2047_v53 }
  0xdd   : > { %884 = vmatmul.mubr.bf16.gmra.mrb[20].mxu0 %v2049_v54  ;;  %964 = vmatmul.mubr.bf16.gmra.mrb[20].mxu1 %v2050_v55 }
  0xde   : > { %893 = vmatprep.mubr.bf16.mxu0 %v2051_v56  ;;  %973 = vmatprep.mubr.bf16.mxu1 %v2053_v57 }
  0xe5   : > { %894 = vmatmul.mubr.bf16.gmra.mrb[24].mxu0 %v2055_v58  ;;  %974 = vmatmul.mubr.bf16.gmra.mrb[24].mxu1 %v2056_v59 }
  0xe6   : > { %903 = vmatprep.mubr.bf16.mxu0 %v2057_v60  ;;  %983 = vmatprep.mubr.bf16.mxu1 %v2059_v61 }
  0xed   : > { %904 = vmatmul.mubr.bf16.gmra.mrb[28].mxu0 %v2061_v62  ;;  %984 = vmatmul.mubr.bf16.gmra.mrb[28].mxu1 %v2062_v63 }
 0x188   : > { %v835_v10 = vpop.f32.mrb[0].mxu0  ;;  %v915_v11 = vpop.f32.mrb[0].mxu1 }
 0x189   : > { %v1210_v12 = vadd.f32 %v2639_v8, %v835_v10  ;;  %v1242_v13 = vadd.f32 %v2639_v8, %v915_v11  ;;  %v837_v14 = vpop.f32.mrb[1].mxu0  ;;  %v917_v15 = vpop.f32.mrb[1].mxu1 }
 0x18a   : > { %v1211_v16 = vadd.f32 %v2642_v9, %v837_v14  ;;  %v1243_v17 = vadd.f32 %v2642_v9, %v917_v15  ;;  %v839_v18 = vpop.f32.mrb[2].mxu0  ;;  %v919_v19 = vpop.f32.mrb[2].mxu1 }
 0x18b   : > { %v1212_v20 = vadd.f32 %v2639_v8, %v839_v18  ;;  %v1244_v21 = vadd.f32 %v2639_v8, %v919_v19  ;;  %v841_v22 = vpop.f32.mrb[3].mxu0  ;;  %v921_v23 = vpop.f32.mrb[3].mxu1 }
 0x18c   : > { %v1765_v24 = vpack.c.bf16 %v1211_v16, %v1210_v12  ;;  %v1781_v25 = vpack.c.bf16 %v1243_v17, %v1242_v13  ;;  %v1213_v26 = vadd.f32 %v2642_v9, %v841_v22  ;;  %v1245_v27 = vadd.f32 %v2642_v9, %v921_v23 }
 0x18e   : > { %1466 = vst [vmem:[%s2654_s2] sm:$0xff] %v1765_v24  ;;  %1482 = vst [vmem:[%s2654_s2 + $0x80] sm:$0xff] %v1781_v25  ;;  %v1766_v28 = vpack.c.bf16 %v1213_v26, %v1212_v20  ;;  %v1782_v29 = vpack.c.bf16 %v1245_v27, %v1244_v21 }
 0x190   : > { %1467 = vst [vmem:[%s2654_s2 + $0x8] sm:$0xff] %v1766_v28  ;;  %1483 = vst [vmem:[%s2654_s2 + $0x88] sm:$0xff] %v1782_v29  ;;  %v845_v30 = vpop.f32.mrb[4].mxu0  ;;  %v925_v31 = vpop.f32.mrb[4].mxu1 }
 0x191   : > { %v1214_v32 = vadd.f32 %v2639_v8, %v845_v30  ;;  %v1246_v33 = vadd.f32 %v2639_v8, %v925_v31  ;;  %v847_v34 = vpop.f32.mrb[5].mxu0  ;;  %v927_v35 = vpop.f32.mrb[5].mxu1 }
 0x192   : > { %v1215_v36 = vadd.f32 %v2642_v9, %v847_v34  ;;  %v1247_v37 = vadd.f32 %v2642_v9, %v927_v35  ;;  %v849_v38 = vpop.f32.mrb[6].mxu0  ;;  %v929_v39 = vpop.f32.mrb[6].mxu1 }
 0x193   : > { %v1216_v40 = vadd.f32 %v2639_v8, %v849_v38  ;;  %v1248_v41 = vadd.f32 %v2639_v8, %v929_v39  ;;  %v851_v42 = vpop.f32.mrb[7].mxu0  ;;  %v931_v43 = vpop.f32.mrb[7].mxu1 }
 0x194   : > { %v1767_v44 = vpack.c.bf16 %v1215_v36, %v1214_v32  ;;  %v1783_v45 = vpack.c.bf16 %v1247_v37, %v1246_v33  ;;  %v1217_v46 = vadd.f32 %v2642_v9, %v851_v42  ;;  %v1249_v47 = vadd.f32 %v2642_v9, %v931_v43 }
 0x196   : > { %1468 = vst [vmem:[%s2654_s2 + $0x10] sm:$0xff] %v1767_v44  ;;  %1484 = vst [vmem:[%s2654_s2 + $0x90] sm:$0xff] %v1783_v45  ;;  %v1768_v48 = vpack.c.bf16 %v1217_v46, %v1216_v40  ;;  %v1784_v49 = vpack.c.bf16 %v1249_v47, %v1248_v41 }
 0x198   : > { %1469 = vst [vmem:[%s2654_s2 + $0x18] sm:$0xff] %v1768_v48  ;;  %1485 = vst [vmem:[%s2654_s2 + $0x98] sm:$0xff] %v1784_v49  ;;  %v855_v50 = vpop.f32.mrb[8].mxu0  ;;  %v935_v51 = vpop.f32.mrb[8].mxu1 }
 0x199   : > { %v1218_v52 = vadd.f32 %v2639_v8, %v855_v50  ;;  %v1250_v53 = vadd.f32 %v2639_v8, %v935_v51  ;;  %v857_v54 = vpop.f32.mrb[9].mxu0  ;;  %v937_v55 = vpop.f32.mrb[9].mxu1 }
 0x19a   : > { %v1219_v56 = vadd.f32 %v2642_v9, %v857_v54  ;;  %v1251_v57 = vadd.f32 %v2642_v9, %v937_v55  ;;  %v859_v58 = vpop.f32.mrb[10].mxu0  ;;  %v939_v59 = vpop.f32.mrb[10].mxu1 }
 0x19b   : > { %v1220_v60 = vadd.f32 %v2639_v8, %v859_v58  ;;  %v1252_v61 = vadd.f32 %v2639_v8, %v939_v59  ;;  %v861_v62 = vpop.f32.mrb[11].mxu0  ;;  %v941_v63 = vpop.f32.mrb[11].mxu1 }
 0x19c   : > { %v1769_v0 = vpack.c.bf16 %v1219_v56, %v1218_v52  ;;  %v1785_v1 = vpack.c.bf16 %v1251_v57, %v1250_v53  ;;  %v1221_v2 = vadd.f32 %v2642_v9, %v861_v62  ;;  %v1253_v3 = vadd.f32 %v2642_v9, %v941_v63 }
 0x19e   : > { %1470 = vst [vmem:[%s2654_s2 + $0x20] sm:$0xff] %v1769_v0  ;;  %1486 = vst [vmem:[%s2654_s2 + $0xa0] sm:$0xff] %v1785_v1  ;;  %v1770_v4 = vpack.c.bf16 %v1221_v2, %v1220_v60  ;;  %v1786_v5 = vpack.c.bf16 %v1253_v3, %v1252_v61 }
 0x1a0   : > { %1471 = vst [vmem:[%s2654_s2 + $0x28] sm:$0xff] %v1770_v4  ;;  %1487 = vst [vmem:[%s2654_s2 + $0xa8] sm:$0xff] %v1786_v5  ;;  %v865_v6 = vpop.f32.mrb[12].mxu0  ;;  %v945_v7 = vpop.f32.mrb[12].mxu1 }
 0x1a1   : > { %v1222_v10 = vadd.f32 %v2639_v8, %v865_v6  ;;  %v1254_v11 = vadd.f32 %v2639_v8, %v945_v7  ;;  %v867_v12 = vpop.f32.mrb[13].mxu0  ;;  %v947_v13 = vpop.f32.mrb[13].mxu1 }
 0x1a2   : > { %v1223_v14 = vadd.f32 %v2642_v9, %v867_v12  ;;  %v1255_v15 = vadd.f32 %v2642_v9, %v947_v13  ;;  %v869_v16 = vpop.f32.mrb[14].mxu0  ;;  %v949_v17 = vpop.f32.mrb[14].mxu1 }
 0x1a3   : > { %v1224_v18 = vadd.f32 %v2639_v8, %v869_v16  ;;  %v1256_v19 = vadd.f32 %v2639_v8, %v949_v17  ;;  %v871_v20 = vpop.f32.mrb[15].mxu0  ;;  %v951_v21 = vpop.f32.mrb[15].mxu1 }
 0x1a4   : > { %v1771_v22 = vpack.c.bf16 %v1223_v14, %v1222_v10  ;;  %v1787_v23 = vpack.c.bf16 %v1255_v15, %v1254_v11  ;;  %v1225_v24 = vadd.f32 %v2642_v9, %v871_v20  ;;  %v1257_v25 = vadd.f32 %v2642_v9, %v951_v21 }
 0x1a6   : > { %1472 = vst [vmem:[%s2654_s2 + $0x30] sm:$0xff] %v1771_v22  ;;  %1488 = vst [vmem:[%s2654_s2 + $0xb0] sm:$0xff] %v1787_v23  ;;  %v1772_v26 = vpack.c.bf16 %v1225_v24, %v1224_v18  ;;  %v1788_v27 = vpack.c.bf16 %v1257_v25, %v1256_v19 }
 0x1a8   : > { %1473 = vst [vmem:[%s2654_s2 + $0x38] sm:$0xff] %v1772_v26  ;;  %1489 = vst [vmem:[%s2654_s2 + $0xb8] sm:$0xff] %v1788_v27  ;;  %v875_v28 = vpop.f32.mrb[16].mxu0  ;;  %v955_v29 = vpop.f32.mrb[16].mxu1 }
 0x1a9   : > { %v1226_v30 = vadd.f32 %v2639_v8, %v875_v28  ;;  %v1258_v31 = vadd.f32 %v2639_v8, %v955_v29  ;;  %v877_v32 = vpop.f32.mrb[17].mxu0  ;;  %v957_v33 = vpop.f32.mrb[17].mxu1 }
 0x1aa   : > { %v1227_v34 = vadd.f32 %v2642_v9, %v877_v32  ;;  %v1259_v35 = vadd.f32 %v2642_v9, %v957_v33  ;;  %v879_v36 = vpop.f32.mrb[18].mxu0  ;;  %v959_v37 = vpop.f32.mrb[18].mxu1 }
 0x1ab   : > { %v1228_v38 = vadd.f32 %v2639_v8, %v879_v36  ;;  %v1260_v39 = vadd.f32 %v2639_v8, %v959_v37  ;;  %v881_v40 = vpop.f32.mrb[19].mxu0  ;;  %v961_v41 = vpop.f32.mrb[19].mxu1 }
 0x1ac   : > { %v1773_v42 = vpack.c.bf16 %v1227_v34, %v1226_v30  ;;  %v1789_v43 = vpack.c.bf16 %v1259_v35, %v1258_v31  ;;  %v1229_v44 = vadd.f32 %v2642_v9, %v881_v40  ;;  %v1261_v45 = vadd.f32 %v2642_v9, %v961_v41 }
 0x1ae   : > { %1474 = vst [vmem:[%s2654_s2 + $0x40] sm:$0xff] %v1773_v42  ;;  %1490 = vst [vmem:[%s2654_s2 + $0xc0] sm:$0xff] %v1789_v43  ;;  %v1774_v46 = vpack.c.bf16 %v1229_v44, %v1228_v38  ;;  %v1790_v47 = vpack.c.bf16 %v1261_v45, %v1260_v39 }
 0x1b0   : > { %1475 = vst [vmem:[%s2654_s2 + $0x48] sm:$0xff] %v1774_v46  ;;  %1491 = vst [vmem:[%s2654_s2 + $0xc8] sm:$0xff] %v1790_v47  ;;  %v885_v48 = vpop.f32.mrb[20].mxu0  ;;  %v965_v49 = vpop.f32.mrb[20].mxu1 }
 0x1b1   : > { %v1230_v50 = vadd.f32 %v2639_v8, %v885_v48  ;;  %v1262_v51 = vadd.f32 %v2639_v8, %v965_v49  ;;  %v887_v52 = vpop.f32.mrb[21].mxu0  ;;  %v967_v53 = vpop.f32.mrb[21].mxu1 }
 0x1b2   : > { %v1231_v54 = vadd.f32 %v2642_v9, %v887_v52  ;;  %v1263_v55 = vadd.f32 %v2642_v9, %v967_v53  ;;  %v889_v56 = vpop.f32.mrb[22].mxu0  ;;  %v969_v57 = vpop.f32.mrb[22].mxu1 }
 0x1b3   : > { %v1232_v58 = vadd.f32 %v2639_v8, %v889_v56  ;;  %v1264_v59 = vadd.f32 %v2639_v8, %v969_v57  ;;  %v891_v60 = vpop.f32.mrb[23].mxu0  ;;  %v971_v61 = vpop.f32.mrb[23].mxu1 }
 0x1b4   : > { %v1775_v62 = vpack.c.bf16 %v1231_v54, %v1230_v50  ;;  %v1791_v63 = vpack.c.bf16 %v1263_v55, %v1262_v51  ;;  %v1233_v0 = vadd.f32 %v2642_v9, %v891_v60  ;;  %v1265_v1 = vadd.f32 %v2642_v9, %v971_v61 }
 0x1b6   : > { %1476 = vst [vmem:[%s2654_s2 + $0x50] sm:$0xff] %v1775_v62  ;;  %1492 = vst [vmem:[%s2654_s2 + $0xd0] sm:$0xff] %v1791_v63  ;;  %v1776_v2 = vpack.c.bf16 %v1233_v0, %v1232_v58  ;;  %v1792_v3 = vpack.c.bf16 %v1265_v1, %v1264_v59 }
 0x1b8   : > { %1477 = vst [vmem:[%s2654_s2 + $0x58] sm:$0xff] %v1776_v2  ;;  %1493 = vst [vmem:[%s2654_s2 + $0xd8] sm:$0xff] %v1792_v3  ;;  %v895_v4 = vpop.f32.mrb[24].mxu0  ;;  %v975_v5 = vpop.f32.mrb[24].mxu1 }
 0x1b9   : > { %v1234_v6 = vadd.f32 %v2639_v8, %v895_v4  ;;  %v1266_v7 = vadd.f32 %v2639_v8, %v975_v5  ;;  %v897_v10 = vpop.f32.mrb[25].mxu0  ;;  %v977_v11 = vpop.f32.mrb[25].mxu1 }
 0x1ba   : > { %v1235_v12 = vadd.f32 %v2642_v9, %v897_v10  ;;  %v1267_v13 = vadd.f32 %v2642_v9, %v977_v11  ;;  %v899_v14 = vpop.f32.mrb[26].mxu0  ;;  %v979_v15 = vpop.f32.mrb[26].mxu1 }
 0x1bb   : > { %v1236_v16 = vadd.f32 %v2639_v8, %v899_v14  ;;  %v1268_v17 = vadd.f32 %v2639_v8, %v979_v15  ;;  %v901_v18 = vpop.f32.mrb[27].mxu0  ;;  %v981_v19 = vpop.f32.mrb[27].mxu1 }
 0x1bc   : > { %v1777_v20 = vpack.c.bf16 %v1235_v12, %v1234_v6  ;;  %v1793_v21 = vpack.c.bf16 %v1267_v13, %v1266_v7  ;;  %v1237_v22 = vadd.f32 %v2642_v9, %v901_v18  ;;  %v1269_v23 = vadd.f32 %v2642_v9, %v981_v19 }
 0x1be   : > { %1478 = vst [vmem:[%s2654_s2 + $0x60] sm:$0xff] %v1777_v20  ;;  %1494 = vst [vmem:[%s2654_s2 + $0xe0] sm:$0xff] %v1793_v21  ;;  %v1778_v24 = vpack.c.bf16 %v1237_v22, %v1236_v16  ;;  %v1794_v25 = vpack.c.bf16 %v1269_v23, %v1268_v17 }
 0x1c0   : > { %1479 = vst [vmem:[%s2654_s2 + $0x68] sm:$0xff] %v1778_v24  ;;  %1495 = vst [vmem:[%s2654_s2 + $0xe8] sm:$0xff] %v1794_v25  ;;  %v905_v26 = vpop.f32.mrb[28].mxu0  ;;  %v985_v27 = vpop.f32.mrb[28].mxu1 }
 0x1c1   : > { %v1238_v28 = vadd.f32 %v2639_v8, %v905_v26  ;;  %v1270_v29 = vadd.f32 %v2639_v8, %v985_v27  ;;  %v907_v30 = vpop.f32.mrb[29].mxu0  ;;  %v987_v31 = vpop.f32.mrb[29].mxu1 }
 0x1c2   : > { %v1239_v32 = vadd.f32 %v2642_v9, %v907_v30  ;;  %v1271_v33 = vadd.f32 %v2642_v9, %v987_v31  ;;  %v909_v34 = vpop.f32.mrb[30].mxu0  ;;  %v989_v35 = vpop.f32.mrb[30].mxu1 }
 0x1c3   : > { %v1240_v36 = vadd.f32 %v2639_v8, %v909_v34  ;;  %v1272_v37 = vadd.f32 %v2639_v8, %v989_v35  ;;  %v911_v38 = vpop.f32.mrb[31].mxu0  ;;  %v991_v39 = vpop.f32.mrb[31].mxu1 }
 0x1c4   : > { %v1779_v40 = vpack.c.bf16 %v1239_v32, %v1238_v28  ;;  %v1795_v41 = vpack.c.bf16 %v1271_v33, %v1270_v29  ;;  %v1241_v42 = vadd.f32 %v2642_v9, %v911_v38  ;;  %v1273_v43 = vadd.f32 %v2642_v9, %v991_v39 }
 0x1c6   : > { %1480 = vst [vmem:[%s2654_s2 + $0x70] sm:$0xff] %v1779_v40  ;;  %1496 = vst [vmem:[%s2654_s2 + $0xf0] sm:$0xff] %v1795_v41  ;;  %v1780_v8 = vpack.c.bf16 %v1241_v42, %v1240_v36  ;;  %v1796_v44 = vpack.c.bf16 %v1273_v43, %v1272_v37 }
 0x1c8   : > { %1481 = vst [vmem:[%s2654_s2 + $0x78] sm:$0xff] %v1780_v8  ;;  %1497 = vst [vmem:[%s2654_s2 + $0xf8] sm:$0xff] %v1796_v44 }
 0x1c9   : > { %2136 = shalt.err (!%p2133_p2)
}
 0x1ca   : > { %s2137_s21 = scalar_lea.hbm %s2746_s4, 4096  ;;  %s2141_s22 = scalar_lea.hbm %s2881_s8, 24576 }
 0x1cb   : > { %p2138_p5 = scmp.ne.s32.totalorder %s2746_s4, %s2137_s21  ;;  %p2142_p13 = scmp.lt.u32.totalorder %s2746_s4, %s2881_s8 }
 0x1cc   : > { %p2143_p6 = scmp.lt.u32.totalorder %s2141_s22, %s2137_s21  ;;  %p2145_p12 = scmp.lt.u32.totalorder %s2137_s21, %s2746_s4 }
 0x1cd   : > { %p2139_p3 = pnand %p2138_p5, %p2882_p9 }
 0x1ce   : > { %p2144_p1 = por %p2143_p6, %p2142_p13 }
 0x1cf   : > { %p2140_p7 = pneg %p2139_p3 }
 0x1d0   : > { %p2146_p0 = por %p2145_p12, %p2144_p1 }
 0x1d2   : > { %p2147_p4 = pnand %p2146_p0, %p2140_p7 }
 0x1d4   : > { %2150 = shalt.err (!%p2147_p4)
}
 0x1d5   : > { %s2281_s10 = smov 128   ;;  %s2282_s27 = smov 384  }
 0x1d6   : > { %s2283_s9 = smov 8  }
 0x1d7   : > { %1834 = dma.vmem_to_hbm [thread:$0]  (%p2882_p9), %s2748_s18, 4096, %s2746_s4, %s2756_s11, %s2281_s10, %s2282_s27, %s2283_s9  }
 0x1d8 PF: > { %p1848_p10 = scmp.ge.s32.totalorder %s2273_s25, 2  ;;  %s1530_s15 = sand.u32 1, %s2221_s12  }
 0x1d9   : > { %p2883_p8 = scmp.ne.s32.totalorder %s2871_s30, 0  ;;  %s1531_s24 = scalar_lea.sflag [#allocation5], %s1530_s15 }
 0x1db   : > { %p1844_p11 = pnand %p1848_p10, %p2883_p8 }
 0x1dd   : > { %2216 = dma.done.wait (!%p1844_p11), %s1531_s24, 4096  }
 0x1de   : > { %2218 = vsyncadd (!%p1844_p11), %s1531_s24, 4294963200  ;;  %s22_s25 = sadd.s32 1, %s2273_s25   ;;  %s2885_s18 = sld [smem:[#allocation16_spill]] }
 0x1df   : > { %p2785_p2 = scmp.ge.s32.totalorder %s22_s25, 8   ;;  %s2886_s22 = sld [smem:[#allocation13_spill]] }
 0x1e0   : > { %s2887_s30 = sld [smem:[#allocation14_spill]]  ;;  %s2888_s24 = sld [smem:[#allocation15_spill]] }
 0x1e1   : > { %s2889_s12 = smov %s2225_s13  ;;  %s2890_s13 = smov %s2229_s14 }
 0x1e2   : > { %s2891_s14 = smov %s2498_s3  ;;  %s2892_s15 = smov %s2237_s16 }
 0x1e3   : > { %s2893_s16 = smov %s2241_s17  ;;  %s2898_s21 = smov %s2265_s23 }
 0x1e4   : > { %s2894_s17 = smov %s2885_s18  ;;  %s2895_s18 = smov %s2249_s19 }
 0x1e5   : > { %s2896_s19 = smov %s2253_s20  ;;  %s2897_s20 = smov %s2495_s6 }
 0x1e6   : > { %s2899_s23 = smov %s2887_s30  ;;  %21 = sbr.rel (!%p2785_p2) target bundleno = 16 (0x10), region = 101 }
 0x1ed   :  { %1536 = vsyncpa [#allocation4], 1 }
 0x1ee   :  { %1538 = vsyncpa [#allocation4 + $0x1], 1 }
 0x1ef   :  { %1539 = vsyncpa [#allocation7], 1 }
 0x1f0   :  { %1541 = vsyncpa [#allocation7 + $0x1], 1 }
 0x1f1   :  { %1542 = vsyncpa [#allocation5], 1 }
 0x1f2   :  { %1544 = vsyncpa [#allocation5 + $0x1], 1 }

</bundles_post_ra>
